<compile_context>
chip_gen: v7x
topology: tpu7x:2x2x1
jax: 0.10.0
libtpu: 0.0.40
codegen_flags: <defaults>
</compile_context>

<pallas_src>
import functools

import jax
import jax.numpy as jnp
from jax.experimental import pallas as pl
from jax.experimental.pallas import tpu as pltpu


def _round_up(x, m):
    return (x + m - 1) // m * m


def _make_index_maps(seq_outer, num_s, with_prefetch):
    """Index maps for (token blocks, position rows, constant blocks)."""
    if with_prefetch:          # gather path: maps also receive the SMEM ids ref
        if seq_outer:
            token = lambda s, b, ids: (b * num_s + s, 0)   # noqa: E731
            pos = lambda s, b, ids: (s, 0)                 # noqa: E731
            const = lambda s, b, ids: (0, 0)               # noqa: E731
        else:
            token = lambda b, s, ids: (b * num_s + s, 0)   # noqa: E731
            pos = lambda b, s, ids: (s, 0)                 # noqa: E731
            const = lambda b, s, ids: (0, 0)               # noqa: E731
    else:
        if seq_outer:
            token = lambda s, b: (b * num_s + s, 0)        # noqa: E731
            pos = lambda s, b: (s, 0)                      # noqa: E731
            const = lambda s, b: (0, 0)                    # noqa: E731
        else:
            token = lambda b, s: (b * num_s + s, 0)        # noqa: E731
            pos = lambda b, s: (s, 0)                      # noqa: E731
            const = lambda b, s: (0, 0)                    # noqa: E731
    return token, pos, const


def _finish_tile(word_emb, tids, type_tab, pos, gamma, beta, out_ref, *, eps,
                 h_valid):
    """Type-emb select + sum + TF-style LayerNorm (lane-masked if H padded)."""
    ts, h_pad = out_ref.shape

    # Type embedding: unrolled VPU select chain (type vocab is tiny).
    ttab = type_tab.astype(jnp.float32)                       # (T, H_pad)
    n_types = ttab.shape[0]
    type_emb = jnp.broadcast_to(ttab[0:1, :], (ts, h_pad))
    for t in range(1, n_types):
        type_emb = jnp.where(tids == t, ttab[t:t + 1, :], type_emb)

    # Sum + LayerNorm in f32.  Padded H lanes of every table are zero, so the
    # plain sum over h_pad lanes equals the sum over the true H lanes.
    x = word_emb + pos.astype(jnp.float32) + type_emb
    inv_h = 1.0 / float(h_valid)
    u = jnp.sum(x, axis=-1, keepdims=True) * inv_h
    d = x - u
    if h_valid != h_pad:
        lane = jax.lax.broadcasted_iota(jnp.int32, (ts, h_pad), 1)
        d = jnp.where(lane < h_valid, d, 0.0)                 # mask padded lanes
    s = jnp.sum(d * d, axis=-1, keepdims=True) * inv_h
    xn = d * jax.lax.rsqrt(s + eps)                           # EUP, not a divide
    y = gamma.astype(jnp.float32) * xn + beta.astype(jnp.float32)

    # TODO(synk): dropout is identity in eval mode; training-mode dropout would
    # use pltpu.prng_seed / pltpu.prng_random_bits here.
    out_ref[...] = y.astype(out_ref.dtype)


def _embeddings_onehot_kernel(ids_ref, tids_ref, word_ref, type_ref, pos_ref,
                              gamma_ref, beta_ref, out_ref, *, eps, h_valid,
                              v_chunk):
    # Small-vocab path: word table resident in VMEM, gather as one-hot MXU
    # matmuls chunked over the vocab axis (keeps iota/one-hot temporaries
    # small even for large seq tiles).
    ids = ids_ref[...]                                        # (ts, 1) int32
    ts = ids.shape[0]
    v_pad = word_ref.shape[0]

    word_emb = None
    for v0 in range(0, v_pad, v_chunk):
        vc = min(v_chunk, v_pad - v0)
        v_iota = v0 + jax.lax.broadcasted_iota(jnp.int32, (ts, vc), 1)
        onehot = (ids == v_iota).astype(word_ref.dtype)       # exact 0/1 values
        part = jnp.dot(onehot, word_ref[pl.ds(v0, vc), :],
                       preferred_element_type=jnp.float32)
        word_emb = part if word_emb is None else word_emb + part

    _finish_tile(word_emb, tids_ref[...], type_ref[...], pos_ref[...],
                 gamma_ref[...], beta_ref[...], out_ref,
                 eps=eps, h_valid=h_valid)


def _embeddings_gather_kernel(ids_sref, tids_ref, word_hbm, type_ref, pos_ref,
                              gamma_ref, beta_ref, out_ref, wbuf, sem, *,
                              eps, h_valid, ts, num_s, seq_outer, lookahead=8):
    # Large-vocab path: token ids live in SMEM (scalar prefetch), the word
    # table stays in HBM, and this tile's rows are gathered with pipelined
    # row DMAs into a VMEM scratch buffer (no wrapper-side jnp.take pass).
    if seq_outer:
        s_idx, b_idx = pl.program_id(0), pl.program_id(1)
    else:
        b_idx, s_idx = pl.program_id(0), pl.program_id(1)
    base = (b_idx * num_s + s_idx) * ts        # first flat token of this tile

    def _start_row(i):
        rid = ids_sref[base + i]
        pltpu.make_async_copy(word_hbm.at[pl.ds(rid, 1), :],
                              wbuf.at[pl.ds(i, 1), :], sem).start()

    # Prime `lookahead` row copies, then wait-one / start-one so a bounded
    # number of DMAs stay in flight and overlap each other.
    for i in range(min(lookahead, ts)):
        _start_row(i)

    def _step(i, carry):
        pltpu.make_async_copy(word_hbm.at[pl.ds(0, 1), :],
                              wbuf.at[pl.ds(i, 1), :], sem).wait()

        @pl.when(i + lookahead < ts)
        def _():
            _start_row(i + lookahead)

        return carry

    jax.lax.fori_loop(0, ts, _step, 0)

    _finish_tile(wbuf[...].astype(jnp.float32), tids_ref[...], type_ref[...],
                 pos_ref[...], gamma_ref[...], beta_ref[...], out_ref,
                 eps=eps, h_valid=h_valid)


def embeddings_forward(input_ids, type_ids, params, *, eps=1e-12,
                       block_seq=512, onehot_vocab_limit=1024):
    """Pallas-backed forward of the Embeddings module (eval mode)."""
    B, S = input_ids.shape
    word_table = params["word"]        # (V, H)
    pos_table = params["pos"]          # (MAX_TOKEN, H)
    type_table = params["type"]        # (T, H)
    V, H = word_table.shape
    T = type_table.shape[0]
    out_dtype = word_table.dtype
    tbl_size = jnp.dtype(word_table.dtype).itemsize

    if type_ids is None:
        type_ids = jnp.zeros_like(input_ids)
    if S > pos_table.shape[0]:
        raise ValueError(f"seq_length={S} exceeds position table rows="
                         f"{pos_table.shape[0]} (PyTorch would index-error)")

    # --- usable VMEM budget: ~75% of physical (96 MiB v5e/v6e, 48 MiB v7x) ---
    try:
        phys_vmem = int(pltpu.get_tpu_info().vmem_capacity_bytes)
    except Exception:                        # conservative (v7x-sized) fallback
        phys_vmem = 64 * 2**20
    vmem_cap = (phys_vmem * 3) // 4

    # --- lane-dense hidden axis: pad H to a multiple of 128 ---
    H_pad = _round_up(H, 128)
    pad_h = H_pad - H
    if pad_h:
        word_table = jnp.pad(word_table, ((0, 0), (0, pad_h)))
        pos_table = jnp.pad(pos_table, ((0, 0), (0, pad_h)))
        type_table = jnp.pad(type_table, ((0, 0), (0, pad_h)))
        gamma = jnp.pad(params["gamma"], (0, pad_h)).reshape(1, H_pad)
        beta = jnp.pad(params["beta"], (0, pad_h)).reshape(1, H_pad)
    else:
        gamma = params["gamma"].reshape(1, H_pad)
        beta = params["beta"].reshape(1, H_pad)

    # --- token-axis tile: as large as the VMEM budget allows ---
    ts = _round_up(min(block_seq, _round_up(S, 8)), 8)
    while ts > 64 and 10 * ts * H_pad * 4 > vmem_cap // 2:
        ts = _round_up(ts // 2, 8)
    S_pad = _round_up(S, ts)
    num_s = S_pad // ts
    pad_s = S_pad - S
    N_pad = B * S_pad

    ids = input_ids.astype(jnp.int32)
    tids = type_ids.astype(jnp.int32)
    if pad_s:
        ids = jnp.pad(ids, ((0, 0), (0, pad_s)))
        tids = jnp.pad(tids, ((0, 0), (0, pad_s)))
    ids_flat = ids.reshape(N_pad, 1)
    tids_flat = tids.reshape(N_pad, 1)

    # Position rows are arange(S) for every batch row -> indexed directly by
    # the seq-tile grid axis.  Pad only to cover tile rounding (rows beyond S
    # are discarded by the final slice), never to extend the valid range.
    if S_pad > pos_table.shape[0]:
        pos_table = jnp.pad(pos_table,
                            ((0, S_pad - pos_table.shape[0]), (0, 0)))

    # Grid order: seq-tile axis outer so the position tile is fetched once per
    # seq tile (not once per (batch, seq tile)).  Use batch-outer when there is
    # only one seq tile so the outer "parallel" axis still has extent >= 2.
    seq_outer = (num_s >= 2) or (B == 1)
    grid = (num_s, B) if seq_outer else (B, num_s)

    onehot_gather = V <= onehot_vocab_limit
    token_map, pos_map, const_map = _make_index_maps(
        seq_outer, num_s, with_prefetch=not onehot_gather)

    if onehot_gather:
        V_pad = _round_up(max(V, 128), 128)
        word_in = (jnp.pad(word_table, ((0, V_pad - V), (0, 0)))
                   if V_pad != V else word_table)
        v_chunk = min(V_pad, 256)
        est = (4 * 2 * ts * 4                       # ids + tids blocks (x2 buf)
               + 2 * 2 * ts * H_pad * tbl_size      # pos + out blocks (x2 buf)
               + V_pad * H_pad * tbl_size           # word table (single buf)
               + (T + 2) * H_pad * tbl_size         # type + gamma + beta
               + ts * v_chunk * (4 + tbl_size)      # iota + one-hot chunk
               + 4 * ts * H_pad * 4)                # f32 temporaries
    else:
        # TODO(synk): for very large B*S the flat SMEM id buffer could be
        # chunked / re-prefetched per grid step instead of held whole.
        ids_1d = ids.reshape(N_pad)                 # scalar prefetch -> SMEM
        est = (2 * 2 * ts * 4                       # tids blocks
               + 2 * 2 * ts * H_pad * tbl_size      # pos + out blocks
               + (T + 2) * H_pad * tbl_size         # type + gamma + beta
               + ts * H_pad * tbl_size              # gathered-row buffer
               + 4 * ts * H_pad * 4)                # f32 temporaries
    vmem_limit = int(min(vmem_cap, max(32 * 2**20, 2 * est)))

    def _run(single_buffer_consts):
        const_kwargs = {}
        if single_buffer_consts:
            # Constant blocks never change across the grid -> single-buffer.
            const_kwargs["pipeline_mode"] = pl.Buffered(1)
        type_spec = pl.BlockSpec((T, H_pad), const_map, **const_kwargs)
        gb_spec = pl.BlockSpec((1, H_pad), const_map, **const_kwargs)
        pos_spec = pl.BlockSpec((ts, H_pad), pos_map)
        tok_spec = pl.BlockSpec((ts, 1), token_map)
        out_spec = pl.BlockSpec((ts, H_pad), token_map)
        cparams = pltpu.CompilerParams(
            dimension_semantics=("parallel", "parallel"),
            vmem_limit_bytes=vmem_limit)
        out_shape = jax.ShapeDtypeStruct((N_pad, H_pad), out_dtype)

        if onehot_gather:
            word_spec = pl.BlockSpec((V_pad, H_pad), const_map, **const_kwargs)
            kernel = functools.partial(_embeddings_onehot_kernel, eps=eps,
                                       h_valid=H, v_chunk=v_chunk)
            return pl.pallas_call(
                kernel,
                out_shape=out_shape,
                grid=grid,
                in_specs=[tok_spec,          # token ids
                          tok_spec,          # type ids
                          word_spec,         # word table (VMEM resident)
                          type_spec,         # type table
                          pos_spec,          # position rows for this seq tile
                          gb_spec,           # gamma
                          gb_spec],          # beta
                out_specs=out_spec,
                compiler_params=cparams,
            )(ids_flat, tids_flat, word_in, type_table, pos_table, gamma, beta)

        kernel = functools.partial(_embeddings_gather_kernel, eps=eps,
                                   h_valid=H, ts=ts, num_s=num_s,
                                   seq_outer=seq_outer)
        grid_spec = pltpu.PrefetchScalarGridSpec(
            num_scalar_prefetch=1,
            grid=grid,
            in_specs=[tok_spec,                           # type ids
                      pl.BlockSpec(memory_space=pl.ANY),  # word table in HBM
                      type_spec,
                      pos_spec,
                      gb_spec,
                      gb_spec],
            out_specs=out_spec,
            scratch_shapes=[
                pltpu.VMEM((ts, H_pad), word_table.dtype),  # gathered rows
                pltpu.SemaphoreType.DMA,                    # row-DMA semaphore
            ],
        )
        return pl.pallas_call(
            kernel,
            out_shape=out_shape,
            grid_spec=grid_spec,
            compiler_params=cparams,
        )(ids_1d, tids_flat, word_table, type_table, pos_table, gamma, beta)

    try:
        out_flat = _run(single_buffer_consts=True)
    except Exception:
        # Fallback for jax versions without BlockSpec(pipeline_mode=Buffered(1));
        # identical kernel, default double-buffering for the constant blocks.
        out_flat = _run(single_buffer_consts=False)

    out = out_flat.reshape(B, S_pad, H_pad)
    if pad_s:
        out = out[:, :S, :]
    if pad_h:
        out = out[:, :, :H]
    return out


def _reference_forward(input_ids, type_ids, params, *, eps=1e-12):
    B, S = input_ids.shape
    if type_ids is None:
        type_ids = jnp.zeros_like(input_ids)
    we = jnp.take(params["word"], input_ids, axis=0)
    pe = jnp.take(params["pos"], jnp.broadcast_to(jnp.arange(S), (B, S)), axis=0)
    te = jnp.take(params["type"], type_ids, axis=0)
    x = we + pe + te
    u = jnp.mean(x, axis=-1, keepdims=True)
    s = jnp.mean((x - u) ** 2, axis=-1, keepdims=True)
    x = (x - u) / jnp.sqrt(s + eps)
    return params["gamma"] * x + params["beta"]


if __name__ == "__main__":
    def run_case(name, vocab, hidden, type_vocab, max_token, B, S, **kw):
        key = jax.random.PRNGKey(0)
        kw_, kp, kt, kid, ktid = jax.random.split(key, 5)
        word = 0.02 * jax.random.normal(kw_, (vocab, hidden), dtype=jnp.float32)
        word = word.at[0].set(0.0)          # padding_idx=0 row (PyTorch init)
        pos = 0.02 * jax.random.normal(kp, (max_token, hidden), jnp.float32)
        typ = 0.02 * jax.random.normal(kt, (type_vocab, hidden), jnp.float32)
        params = {"word": word, "pos": pos, "type": typ,
                  "gamma": jnp.ones((hidden,), jnp.float32),
                  "beta": jnp.zeros((hidden,), jnp.float32)}
        input_ids = jax.random.randint(kid, (B, S), 0, vocab, dtype=jnp.int32)
        type_ids = jax.random.randint(ktid, (B, S), 0, type_vocab,
                                      dtype=jnp.int32)
        out = jax.block_until_ready(
            embeddings_forward(input_ids, type_ids, params, **kw))
        ref = _reference_forward(input_ids, type_ids, params)
        assert out.shape == (B, S, hidden), f"{name}: bad shape {out.shape}"
        assert jnp.allclose(out, ref, atol=1e-4, rtol=1e-4), \
            f"{name}: mismatch vs reference"

    # Config consistent with the module: vocab=64, hidden=32, types=2, MAX_TOKEN=512.
    # Small vocab -> in-kernel one-hot MXU gather path.
    run_case("onehot", vocab=64, hidden=32, type_vocab=2, max_token=512,
             B=2, S=8)
    # Larger vocab -> scalar-prefetch + manual DMA row-gather path; tiny tile
    # forces a multi-tile (seq_tile, batch) grid and exercises seq padding.
    run_case("dma_gather", vocab=4096, hidden=32, type_vocab=2, max_token=512,
             B=2, S=24, block_seq=8)

    print("KERNEL_OK")
</pallas_src>

<mosaic_0001>
module attributes {stable_mosaic.version = 11 : i64} {
  func.func @_embeddings_onehot_kernel(%arg0: i32, %arg1: i32, %arg2: memref<8x1xi32, #tpu.memory_space<vmem>>, %arg3: memref<8x1xi32, #tpu.memory_space<vmem>>, %arg4: memref<128x128xf32, #tpu.memory_space<vmem>>, %arg5: memref<2x128xf32, #tpu.memory_space<vmem>>, %arg6: memref<8x128xf32, #tpu.memory_space<vmem>>, %arg7: memref<1x128xf32, #tpu.memory_space<vmem>>, %arg8: memref<1x128xf32, #tpu.memory_space<vmem>>, %arg9: memref<8x128xf32, #tpu.memory_space<vmem>>) attributes {dimension_semantics = [#tpu.dimension_semantics<parallel>, #tpu.dimension_semantics<parallel>], iteration_bounds = array<i64: 2, 1>, scalar_prefetch = 0 : i64, scratch_operands = 0 : i64, tpu.core_type = #tpu.core_type<tc>, window_params = [{transform_indices = @transform_0, window_bounds = array<i64: 8, 1>}, {transform_indices = @transform_1, window_bounds = array<i64: 8, 1>}, {pipeline_mode = #tpu.pipeline_mode<synchronous>, transform_indices = @transform_2, window_bounds = array<i64: 128, 128>}, {pipeline_mode = #tpu.pipeline_mode<synchronous>, transform_indices = @transform_3, window_bounds = array<i64: 2, 128>}, {transform_indices = @transform_4, window_bounds = array<i64: 8, 128>}, {pipeline_mode = #tpu.pipeline_mode<synchronous>, transform_indices = @transform_5, window_bounds = array<i64: 1, 128>}, {pipeline_mode = #tpu.pipeline_mode<synchronous>, transform_indices = @transform_6, window_bounds = array<i64: 1, 128>}, {transform_indices = @transform_7, window_bounds = array<i64: 8, 128>}]} {
    %c0 = arith.constant 0 : index
    %c0_0 = arith.constant 0 : index
    %0 = vector.load %arg2[%c0, %c0_0] : memref<8x1xi32, #tpu.memory_space<vmem>>, vector<8x1xi32>
    %1 = tpu.iota {dimensions = array<i32: 1>} : vector<8x128xi32>
    %c0_i32 = arith.constant 0 : i32
    %2 = vector.broadcast %c0_i32 : i32 to vector<8x128xi32>
    %3 = arith.addi %2, %1 : vector<8x128xi32>
    %4 = vector.broadcast %0 : vector<8x1xi32> to vector<8x128xi32>
    %5 = arith.cmpi eq, %4, %3 : vector<8x128xi32>
    %6 = arith.extui %5 : vector<8x128xi1> to vector<8x128xi32>
    %7 = arith.sitofp %6 : vector<8x128xi32> to vector<8x128xf32>
    %c0_1 = arith.constant 0 : index
    %c0_2 = arith.constant 0 : index
    %8 = vector.load %arg4[%c0_1, %c0_2] : memref<128x128xf32, #tpu.memory_space<vmem>>, vector<128x128xf32>
    %cst = arith.constant dense<0.000000e+00> : vector<8x128xf32>
    %9 = tpu.matmul %7, %8, %cst {dimension_numbers = #tpu.dot_dimension_numbers<[1], [0], [0], [1], [0, 0, 1, 1], [], []>} : vector<8x128xf32>, vector<128x128xf32>, vector<8x128xf32> -> vector<8x128xf32>
    %c0_3 = arith.constant 0 : index
    %c0_4 = arith.constant 0 : index
    %10 = vector.load %arg3[%c0_3, %c0_4] : memref<8x1xi32, #tpu.memory_space<vmem>>, vector<8x1xi32>
    %c0_5 = arith.constant 0 : index
    %c0_6 = arith.constant 0 : index
    %11 = vector.load %arg5[%c0_5, %c0_6] : memref<2x128xf32, #tpu.memory_space<vmem>>, vector<2x128xf32>
    %c0_7 = arith.constant 0 : index
    %c0_8 = arith.constant 0 : index
    %12 = vector.load %arg6[%c0_7, %c0_8] : memref<8x128xf32, #tpu.memory_space<vmem>>, vector<8x128xf32>
    %c0_9 = arith.constant 0 : index
    %c0_10 = arith.constant 0 : index
    %13 = vector.load %arg7[%c0_9, %c0_10] : memref<1x128xf32, #tpu.memory_space<vmem>>, vector<1x128xf32>
    %c0_11 = arith.constant 0 : index
    %c0_12 = arith.constant 0 : index
    %14 = vector.load %arg8[%c0_11, %c0_12] : memref<1x128xf32, #tpu.memory_space<vmem>>, vector<1x128xf32>
    %15 = vector.extract_strided_slice %11 {offsets = [0, 0], sizes = [1, 128], strides = [1, 1]} : vector<2x128xf32> to vector<1x128xf32>
    %16 = vector.shape_cast %15 : vector<1x128xf32> to vector<1x128xf32>
    %17 = vector.broadcast %16 : vector<1x128xf32> to vector<8x128xf32>
    %c1_i32 = arith.constant 1 : i32
    %18 = vector.broadcast %c1_i32 : i32 to vector<8x1xi32>
    %19 = arith.cmpi eq, %10, %18 : vector<8x1xi32>
    %20 = vector.extract_strided_slice %11 {offsets = [1, 0], sizes = [1, 128], strides = [1, 1]} : vector<2x128xf32> to vector<1x128xf32>
    %21 = vector.shape_cast %19 : vector<8x1xi1> to vector<8x1xi1>
    %22 = vector.broadcast %21 : vector<8x1xi1> to vector<8x128xi1>
    %23 = vector.shape_cast %20 : vector<1x128xf32> to vector<1x128xf32>
    %24 = vector.broadcast %23 : vector<1x128xf32> to vector<8x128xf32>
    %25 = arith.select %22, %24, %17 : vector<8x128xi1>, vector<8x128xf32>
    %26 = arith.addf %9, %12 : vector<8x128xf32>
    %27 = arith.addf %26, %25 : vector<8x128xf32>
    %cst_13 = arith.constant dense<0.000000e+00> : vector<8xf32>
    %28 = vector.multi_reduction <add>, %27, %cst_13 [1] : vector<8x128xf32> to vector<8xf32>
    %29 = vector.shape_cast %28 : vector<8xf32> to vector<8x1xf32>
    %cst_14 = arith.constant 3.125000e-02 : f32
    %30 = vector.broadcast %cst_14 : f32 to vector<8x1xf32>
    %31 = arith.mulf %29, %30 : vector<8x1xf32>
    %32 = vector.broadcast %31 : vector<8x1xf32> to vector<8x128xf32>
    %33 = arith.subf %27, %32 : vector<8x128xf32>
    %34 = tpu.iota {dimensions = array<i32: 1>} : vector<8x128xi32>
    %c32_i32 = arith.constant 32 : i32
    %35 = vector.broadcast %c32_i32 : i32 to vector<8x128xi32>
    %36 = arith.cmpi slt, %34, %35 : vector<8x128xi32>
    %cst_15 = arith.constant 0.000000e+00 : f32
    %37 = vector.broadcast %cst_15 : f32 to vector<8x128xf32>
    %38 = arith.select %36, %33, %37 : vector<8x128xi1>, vector<8x128xf32>
    %39 = arith.mulf %38, %38 : vector<8x128xf32>
    %cst_16 = arith.constant dense<0.000000e+00> : vector<8xf32>
    %40 = vector.multi_reduction <add>, %39, %cst_16 [1] : vector<8x128xf32> to vector<8xf32>
    %41 = vector.shape_cast %40 : vector<8xf32> to vector<8x1xf32>
    %cst_17 = arith.constant 3.125000e-02 : f32
    %42 = vector.broadcast %cst_17 : f32 to vector<8x1xf32>
    %43 = arith.mulf %41, %42 : vector<8x1xf32>
    %cst_18 = arith.constant 9.99999996E-13 : f32
    %44 = vector.broadcast %cst_18 : f32 to vector<8x1xf32>
    %45 = arith.addf %43, %44 : vector<8x1xf32>
    %46 = math.rsqrt %45 : vector<8x1xf32>
    %47 = vector.broadcast %46 : vector<8x1xf32> to vector<8x128xf32>
    %48 = arith.mulf %38, %47 : vector<8x128xf32>
    %49 = vector.broadcast %13 : vector<1x128xf32> to vector<8x128xf32>
    %50 = arith.mulf %49, %48 : vector<8x128xf32>
    %51 = vector.broadcast %14 : vector<1x128xf32> to vector<8x128xf32>
    %52 = arith.addf %50, %51 : vector<8x128xf32>
    %c0_19 = arith.constant 0 : index
    %c0_20 = arith.constant 0 : index
    %53 = vector.load %arg9[%c0_19, %c0_20] : memref<8x128xf32, #tpu.memory_space<vmem>>, vector<8x128xf32>
    tpu.vector_store %arg9[%c0_19, %c0_20], %52 {strides = array<i32>} : memref<8x128xf32, #tpu.memory_space<vmem>>, vector<8x128xf32>,
    return
  }
  func.func @transform_0(%arg0: i32, %arg1: i32) -> (i32, i32) {
    %c1_i32 = arith.constant 1 : i32
    %0 = arith.muli %arg0, %c1_i32 : i32
    %1 = arith.addi %0, %arg1 : i32
    %c0_i32 = arith.constant 0 : i32
    %c0_i32_0 = arith.constant 0 : i32
    return %1, %c0_i32 : i32, i32
  }
  func.func @transform_1(%arg0: i32, %arg1: i32) -> (i32, i32) {
    %c1_i32 = arith.constant 1 : i32
    %0 = arith.muli %arg0, %c1_i32 : i32
    %1 = arith.addi %0, %arg1 : i32
    %c0_i32 = arith.constant 0 : i32
    %c0_i32_0 = arith.constant 0 : i32
    return %1, %c0_i32 : i32, i32
  }
  func.func @transform_2(%arg0: i32, %arg1: i32) -> (i32, i32) {
    %c0_i32 = arith.constant 0 : i32
    %c0_i32_0 = arith.constant 0 : i32
    %c0_i32_1 = arith.constant 0 : i32
    return %c0_i32, %c0_i32_0 : i32, i32
  }
  func.func @transform_3(%arg0: i32, %arg1: i32) -> (i32, i32) {
    %c0_i32 = arith.constant 0 : i32
    %c0_i32_0 = arith.constant 0 : i32
    %c0_i32_1 = arith.constant 0 : i32
    return %c0_i32, %c0_i32_0 : i32, i32
  }
  func.func @transform_4(%arg0: i32, %arg1: i32) -> (i32, i32) {
    %c0_i32 = arith.constant 0 : i32
    %c0_i32_0 = arith.constant 0 : i32
    return %arg1, %c0_i32 : i32, i32
  }
  func.func @transform_5(%arg0: i32, %arg1: i32) -> (i32, i32) {
    %c0_i32 = arith.constant 0 : i32
    %c0_i32_0 = arith.constant 0 : i32
    %c0_i32_1 = arith.constant 0 : i32
    return %c0_i32, %c0_i32_0 : i32, i32
  }
  func.func @transform_6(%arg0: i32, %arg1: i32) -> (i32, i32) {
    %c0_i32 = arith.constant 0 : i32
    %c0_i32_0 = arith.constant 0 : i32
    %c0_i32_1 = arith.constant 0 : i32
    return %c0_i32, %c0_i32_0 : i32, i32
  }
  func.func @transform_7(%arg0: i32, %arg1: i32) -> (i32, i32) {
    %c1_i32 = arith.constant 1 : i32
    %0 = arith.muli %arg0, %c1_i32 : i32
    %1 = arith.addi %0, %arg1 : i32
    %c0_i32 = arith.constant 0 : i32
    %c0_i32_0 = arith.constant 0 : i32
    return %1, %c0_i32 : i32, i32
  }
}

module attributes {stable_mosaic.version = 11 : i64} {
  func.func @_embeddings_onehot_kernel(%arg0: i32, %arg1: i32, %arg2: memref<8x1xi32, #tpu.memory_space<vmem>>, %arg3: memref<8x1xi32, #tpu.memory_space<vmem>>, %arg4: memref<128x128xf32, #tpu.memory_space<vmem>>, %arg5: memref<2x128xf32, #tpu.memory_space<vmem>>, %arg6: memref<8x128xf32, #tpu.memory_space<vmem>>, %arg7: memref<1x128xf32, #tpu.memory_space<vmem>>, %arg8: memref<1x128xf32, #tpu.memory_space<vmem>>, %arg9: memref<8x128xf32, #tpu.memory_space<vmem>>) attributes {dimension_semantics = [#tpu.dimension_semantics<parallel>, #tpu.dimension_semantics<parallel>], iteration_bounds = array<i64: 2, 1>, scalar_prefetch = 0 : i64, scratch_operands = 0 : i64, tpu.core_type = #tpu.core_type<tc>, window_params = [{transform_indices = @transform_0, window_bounds = array<i64: 8, 1>}, {transform_indices = @transform_1, window_bounds = array<i64: 8, 1>}, {pipeline_mode = #tpu.pipeline_mode<synchronous>, transform_indices = @transform_2, window_bounds = array<i64: 128, 128>}, {pipeline_mode = #tpu.pipeline_mode<synchronous>, transform_indices = @transform_3, window_bounds = array<i64: 2, 128>}, {transform_indices = @transform_4, window_bounds = array<i64: 8, 128>}, {pipeline_mode = #tpu.pipeline_mode<synchronous>, transform_indices = @transform_5, window_bounds = array<i64: 1, 128>}, {pipeline_mode = #tpu.pipeline_mode<synchronous>, transform_indices = @transform_6, window_bounds = array<i64: 1, 128>}, {transform_indices = @transform_7, window_bounds = array<i64: 8, 128>}]} {
    %c0 = arith.constant 0 : index
    %c0_0 = arith.constant 0 : index
    %0 = vector.load %arg2[%c0, %c0_0] : memref<8x1xi32, #tpu.memory_space<vmem>>, vector<8x1xi32>
    %1 = tpu.iota {dimensions = array<i32: 1>} : vector<8x128xi32>
    %c0_i32 = arith.constant 0 : i32
    %2 = vector.broadcast %c0_i32 : i32 to vector<8x128xi32>
    %3 = arith.addi %2, %1 : vector<8x128xi32>
    %4 = vector.broadcast %0 : vector<8x1xi32> to vector<8x128xi32>
    %5 = arith.cmpi eq, %4, %3 : vector<8x128xi32>
    %6 = arith.extui %5 : vector<8x128xi1> to vector<8x128xi32>
    %7 = arith.sitofp %6 : vector<8x128xi32> to vector<8x128xf32>
    %c0_1 = arith.constant 0 : index
    %c0_2 = arith.constant 0 : index
    %8 = vector.load %arg4[%c0_1, %c0_2] : memref<128x128xf32, #tpu.memory_space<vmem>>, vector<128x128xf32>
    %cst = arith.constant dense<0.000000e+00> : vector<8x128xf32>
    %9 = tpu.matmul %7, %8, %cst {dimension_numbers = #tpu.dot_dimension_numbers<[1], [0], [0], [1], [0, 0, 1, 1], [], []>} : vector<8x128xf32>, vector<128x128xf32>, vector<8x128xf32> -> vector<8x128xf32>
    %c0_3 = arith.constant 0 : index
    %c0_4 = arith.constant 0 : index
    %10 = vector.load %arg3[%c0_3, %c0_4] : memref<8x1xi32, #tpu.memory_space<vmem>>, vector<8x1xi32>
    %c0_5 = arith.constant 0 : index
    %c0_6 = arith.constant 0 : index
    %11 = vector.load %arg5[%c0_5, %c0_6] : memref<2x128xf32, #tpu.memory_space<vmem>>, vector<2x128xf32>
    %c0_7 = arith.constant 0 : index
    %c0_8 = arith.constant 0 : index
    %12 = vector.load %arg6[%c0_7, %c0_8] : memref<8x128xf32, #tpu.memory_space<vmem>>, vector<8x128xf32>
    %c0_9 = arith.constant 0 : index
    %c0_10 = arith.constant 0 : index
    %13 = vector.load %arg7[%c0_9, %c0_10] : memref<1x128xf32, #tpu.memory_space<vmem>>, vector<1x128xf32>
    %c0_11 = arith.constant 0 : index
    %c0_12 = arith.constant 0 : index
    %14 = vector.load %arg8[%c0_11, %c0_12] : memref<1x128xf32, #tpu.memory_space<vmem>>, vector<1x128xf32>
    %15 = vector.extract_strided_slice %11 {offsets = [0, 0], sizes = [1, 128], strides = [1, 1]} : vector<2x128xf32> to vector<1x128xf32>
    %16 = vector.shape_cast %15 : vector<1x128xf32> to vector<1x128xf32>
    %17 = vector.broadcast %16 : vector<1x128xf32> to vector<8x128xf32>
    %c1_i32 = arith.constant 1 : i32
    %18 = vector.broadcast %c1_i32 : i32 to vector<8x1xi32>
    %19 = arith.cmpi eq, %10, %18 : vector<8x1xi32>
    %20 = vector.extract_strided_slice %11 {offsets = [1, 0], sizes = [1, 128], strides = [1, 1]} : vector<2x128xf32> to vector<1x128xf32>
    %21 = vector.shape_cast %19 : vector<8x1xi1> to vector<8x1xi1>
    %22 = vector.broadcast %21 : vector<8x1xi1> to vector<8x128xi1>
    %23 = vector.shape_cast %20 : vector<1x128xf32> to vector<1x128xf32>
    %24 = vector.broadcast %23 : vector<1x128xf32> to vector<8x128xf32>
    %25 = arith.select %22, %24, %17 : vector<8x128xi1>, vector<8x128xf32>
    %26 = arith.addf %9, %12 : vector<8x128xf32>
    %27 = arith.addf %26, %25 : vector<8x128xf32>
    %cst_13 = arith.constant dense<0.000000e+00> : vector<8xf32>
    %28 = vector.multi_reduction <add>, %27, %cst_13 [1] : vector<8x128xf32> to vector<8xf32>
    %29 = vector.shape_cast %28 : vector<8xf32> to vector<8x1xf32>
    %cst_14 = arith.constant 3.125000e-02 : f32
    %30 = vector.broadcast %cst_14 : f32 to vector<8x1xf32>
    %31 = arith.mulf %29, %30 : vector<8x1xf32>
    %32 = vector.broadcast %31 : vector<8x1xf32> to vector<8x128xf32>
    %33 = arith.subf %27, %32 : vector<8x128xf32>
    %34 = tpu.iota {dimensions = array<i32: 1>} : vector<8x128xi32>
    %c32_i32 = arith.constant 32 : i32
    %35 = vector.broadcast %c32_i32 : i32 to vector<8x128xi32>
    %36 = arith.cmpi slt, %34, %35 : vector<8x128xi32>
    %cst_15 = arith.constant 0.000000e+00 : f32
    %37 = vector.broadcast %cst_15 : f32 to vector<8x128xf32>
    %38 = arith.select %36, %33, %37 : vector<8x128xi1>, vector<8x128xf32>
    %39 = arith.mulf %38, %38 : vector<8x128xf32>
    %cst_16 = arith.constant dense<0.000000e+00> : vector<8xf32>
    %40 = vector.multi_reduction <add>, %39, %cst_16 [1] : vector<8x128xf32> to vector<8xf32>
    %41 = vector.shape_cast %40 : vector<8xf32> to vector<8x1xf32>
    %cst_17 = arith.constant 3.125000e-02 : f32
    %42 = vector.broadcast %cst_17 : f32 to vector<8x1xf32>
    %43 = arith.mulf %41, %42 : vector<8x1xf32>
    %cst_18 = arith.constant 9.99999996E-13 : f32
    %44 = vector.broadcast %cst_18 : f32 to vector<8x1xf32>
    %45 = arith.addf %43, %44 : vector<8x1xf32>
    %46 = math.rsqrt %45 : vector<8x1xf32>
    %47 = vector.broadcast %46 : vector<8x1xf32> to vector<8x128xf32>
    %48 = arith.mulf %38, %47 : vector<8x128xf32>
    %49 = vector.broadcast %13 : vector<1x128xf32> to vector<8x128xf32>
    %50 = arith.mulf %49, %48 : vector<8x128xf32>
    %51 = vector.broadcast %14 : vector<1x128xf32> to vector<8x128xf32>
    %52 = arith.addf %50, %51 : vector<8x128xf32>
    %c0_19 = arith.constant 0 : index
    %c0_20 = arith.constant 0 : index
    %53 = vector.load %arg9[%c0_19, %c0_20] : memref<8x128xf32, #tpu.memory_space<vmem>>, vector<8x128xf32>
    tpu.vector_store %arg9[%c0_19, %c0_20], %52 {strides = array<i32>} : memref<8x128xf32, #tpu.memory_space<vmem>>, vector<8x128xf32>,
    return
  }
  func.func @transform_0(%arg0: i32, %arg1: i32) -> (i32, i32) {
    %c1_i32 = arith.constant 1 : i32
    %0 = arith.muli %arg0, %c1_i32 : i32
    %1 = arith.addi %0, %arg1 : i32
    %c0_i32 = arith.constant 0 : i32
    %c0_i32_0 = arith.constant 0 : i32
    return %1, %c0_i32 : i32, i32
  }
  func.func @transform_1(%arg0: i32, %arg1: i32) -> (i32, i32) {
    %c1_i32 = arith.constant 1 : i32
    %0 = arith.muli %arg0, %c1_i32 : i32
    %1 = arith.addi %0, %arg1 : i32
    %c0_i32 = arith.constant 0 : i32
    %c0_i32_0 = arith.constant 0 : i32
    return %1, %c0_i32 : i32, i32
  }
  func.func @transform_2(%arg0: i32, %arg1: i32) -> (i32, i32) {
    %c0_i32 = arith.constant 0 : i32
    %c0_i32_0 = arith.constant 0 : i32
    %c0_i32_1 = arith.constant 0 : i32
    return %c0_i32, %c0_i32_0 : i32, i32
  }
  func.func @transform_3(%arg0: i32, %arg1: i32) -> (i32, i32) {
    %c0_i32 = arith.constant 0 : i32
    %c0_i32_0 = arith.constant 0 : i32
    %c0_i32_1 = arith.constant 0 : i32
    return %c0_i32, %c0_i32_0 : i32, i32
  }
  func.func @transform_4(%arg0: i32, %arg1: i32) -> (i32, i32) {
    %c0_i32 = arith.constant 0 : i32
    %c0_i32_0 = arith.constant 0 : i32
    return %arg1, %c0_i32 : i32, i32
  }
  func.func @transform_5(%arg0: i32, %arg1: i32) -> (i32, i32) {
    %c0_i32 = arith.constant 0 : i32
    %c0_i32_0 = arith.constant 0 : i32
    %c0_i32_1 = arith.constant 0 : i32
    return %c0_i32, %c0_i32_0 : i32, i32
  }
  func.func @transform_6(%arg0: i32, %arg1: i32) -> (i32, i32) {
    %c0_i32 = arith.constant 0 : i32
    %c0_i32_0 = arith.constant 0 : i32
    %c0_i32_1 = arith.constant 0 : i32
    return %c0_i32, %c0_i32_0 : i32, i32
  }
  func.func @transform_7(%arg0: i32, %arg1: i32) -> (i32, i32) {
    %c1_i32 = arith.constant 1 : i32
    %0 = arith.muli %arg0, %c1_i32 : i32
    %1 = arith.addi %0, %arg1 : i32
    %c0_i32 = arith.constant 0 : i32
    %c0_i32_0 = arith.constant 0 : i32
    return %1, %c0_i32 : i32, i32
  }
}

</mosaic_0001>

<bundles_post_ra>
// kernel: tpu_custom_call.1
= control target key start
LH: loop header
LB: loop body
LE: loop exit
PB: predicated region body
PF: predicated region fallthrough
CT: control target
= control target key end

     0   :  { %12 = vsyncpa [#allocation3], 0  ;;  %s1196_s0 = inlined_call_operand.vmem [shape: s32[16,1], index: 0, kind: input, shape index: {}]   ;;  %s1197_s1 = inlined_call_operand.vmem [shape: s32[16,1], index: 1, kind: input, shape index: {}]   ;;  %s1198_s2 = inlined_call_operand.hbm [shape: f32[128,128], index: 2, kind: input, shape index: {}]   ;;  %s1199_s3 = inlined_call_operand.vmem [shape: f32[2,128], index: 3, kind: input, shape index: {}]   ;;  %s1200_s4 = inlined_call_operand.hbm [shape: f32[512,128], index: 4, kind: input, shape index: {}]   ;;  %s1201_s5 = inlined_call_operand.vmem [shape: f32[1,128], index: 5, kind: input, shape index: {}]   ;;  %s1202_s6 = inlined_call_operand.vmem [shape: f32[1,128], index: 6, kind: input, shape index: {}]   ;;  %s1203_s7 = inlined_call_operand.hbm [shape: f32[16,128], index: 7, kind: output, shape index: {}]  }
   0x1   :  { %13 = vsyncpa [#allocation6], 0 }
   0x2   :  { %14 = vsyncpa [#allocation4], 0 }
   0x3   :  { %16 = vsyncpa [#allocation4 + $0x1], 0  ;;  %s994_s24 = smov 0   ;;  %s996_s25 = smov 0  }
   0x4   :  { %s998_s26 = smov 0   ;;  %s1000_s27 = smov 0  }
   0x5   :  { %s1002_s28 = smov 0   ;;  %s1004_s29 = smov 0  }
   0x6 LB: > { %1212 = sst [smem:[#allocation11_spill]] %s930_s26  ;;  %s618_s30 = sadd.s32 4294967295, %s942_s29   ;;  %s942_s29 = sphi %s1004_s29, %s22_s29   ;;  %s938_s28 = sphi %s1002_s28, %s1230_s28   ;;  %s934_s27 = sphi %s1000_s27, %s1229_s27   ;;  %s930_s26 = sphi %s998_s26, %s1228_s26   ;;  %s926_s25 = sphi %s996_s25, %s1232_s25   ;;  %s922_s24 = sphi %s994_s24, %s1231_s24  }
   0x7   : > { %1213 = sst [smem:[#allocation12_spill]] %s938_s28  ;;  %s619_s8 = sadd.s32 4294967294, %s942_s29  }
   0x8   : > { %s34_s9 = sadd.s32 1, %s938_s28  ;;  %s209_s10 = sadd.s32 1, %s930_s26 }
   0x9   : > { %p36_p0 = scmp.ge.s32.totalorder %s34_s9, 2  ;;  %p219_p1 = scmp.ne.s32.totalorder %s930_s26, %s926_s25 }
   0xa   : > { %p220_p2 = scmp.eq.s32.totalorder %s618_s30, 1  ;;  %p225_p3 = scmp.ne.s32.totalorder %s926_s25, %s922_s24 }
   0xb   : > { %s1234_s9 = smov (%p36_p0, %s34_s9), 0  ;;  %p226_p5 = scmp.eq.s32.totalorder %s619_s8, 1 }
   0xc   : > { %1214 = sst [smem:[#allocation13_spill]] %s1234_s9  ;;  %p1034_p4 = por %p220_p2, %p219_p1 }
   0xd   : > { %s206_s12 = ssub.s32 %s938_s28, %s1234_s9  ;;  %p620_p6 = scmp.ge.s32.totalorder %s942_s29, 1 }
   0xe   : > { %s1215_s11 = scalar_select %p1034_p4, 1, 0 }
   0xf   : > { %p207_p7 = scmp.eq.s32.totalorder %s206_s12, 0  ;;  %p1041_p8 = por %p226_p5, %p225_p3 }
  0x10   : > { %p233_p9 = scmp.lt.s32.totalorder %s942_s29, 3  ;;  %p1053_p11 = scmp.eq.s32.totalorder %s618_s30, 0 }
  0x11   : > { %s1216_s13 = scalar_select %p1041_p8, 1, 0 }
  0x12   : > { %s1047_s14 = scalar_select %p207_p7, %s930_s26, %s209_s10  }
  0x13   : > { %1217 = sst [smem:[#allocation14_spill]] %s1216_s13  ;;  %p1049_p10 = pnand %p620_p6, %p233_p9 }
  0x14   : > { %1218 = sst [smem:[#allocation15_spill]] %s1047_s14  ;;  %s944_s17 = smov [#allocation2]  }
  0x15   : > { %s1219_s15 = scalar_select %p1049_p10, 1, 0 }
  0x16   : > { %s1220_s16 = scalar_select %p1053_p11, 1, 0 }
  0x17   : > { %p724_p12 = pneg %p1049_p10  ;;  %s245_s18 = sshll.u32 %s944_s17, 4  ;;  %s246_s18 = int_to_ptr.vmem [resolvable:$true] %s245_s18 }
  0x18   : > { %s945_s20 = smov [#allocation5]   ;;  %s800_s30 = scalar_lea.hbm %s1198_s2, 2048 }
  0x19   : > { %p1061_p13 = pnand %p1053_p11, %p724_p12  ;;  %s264_s21 = sshll.u32 %s945_s20, 4  ;;  %s1065_s21 = int_to_ptr.vmem [resolvable:$true] %s264_s21 }
  0x1a   : > { %p801_p0 = scmp.ne.s32.totalorder %s1198_s2, %s800_s30  ;;  %p807_p5 = scmp.lt.u32.totalorder %s800_s30, %s1198_s2 }
  0x1b   : > { %p802_p1 = pneg %p1061_p13 }
  0x1d   : > { %p803_p2 = pnand %p802_p1, %p801_p0 }
  0x1f   : > { %p804_p3 = pneg %p803_p2 }
  0x21   : > { %p809_p6 = pnand %p807_p5, %p804_p3 }
  0x23   : > { %812 = shalt.err (!%p809_p6)
}
  0x24   : > { %s813_s20 = scalar_lea.vmem %s246_s18, 2048  ;;  %p821_p8 = scmp.lt.s32.totalorder %s246_s18, %s246_s18 }
  0x25   : > { %p814_p7 = scmp.ne.s32.totalorder %s246_s18, %s813_s20  ;;  %p822_p4 = scmp.lt.s32.totalorder %s813_s20, %s813_s20 }
  0x27   : > { %p816_p9 = pnand %p814_p7, %p802_p1  ;;  %p823_p11 = por %p822_p4, %p821_p8 }
  0x29   : > { %p817_p12 = pneg %p816_p9 }
  0x2b   : > { %p824_p10 = pnand %p823_p11, %p817_p12 }
  0x2d   : > { %827 = shalt.err (!%p824_p10)
}
  0x2e   : > { %s946_s22 = smov 128   ;;  %s947_s23 = smov 8  }
  0x2f   : > { %727 = dma.hbm_to_vmem [thread:$0]  (!%p1061_p13), %s1198_s2, 2048, %s246_s18, [#allocation3], %s946_s22, %s946_s22, %s947_s23  }
  0x30   : > { %s828_s17 = scalar_lea.hbm %s1200_s4, 128  ;;  %s833_s26 = scalar_lea.hbm %s1200_s4, 8192 }
  0x31   : > { %p829_p0 = scmp.ne.s32.totalorder %s1200_s4, %s828_s17  ;;  %p834_p10 = scmp.lt.u32.totalorder %s833_s26, %s828_s17 }
  0x32   : > { %p835_p11 = scmp.lt.u32.totalorder %s828_s17, %s1200_s4 }
  0x33   : > { %p831_p4 = pnand %p829_p0, %p802_p1 }
  0x34   : > { %p836_p2 = por %p835_p11, %p834_p10 }
  0x35   : > { %p832_p8 = pneg %p831_p4 }
  0x37   : > { %p837_p3 = pnand %p836_p2, %p832_p8 }
  0x39   : > { %840 = shalt.err (!%p837_p3)
}
  0x3a   : > { %s841_s28 = scalar_lea.vmem %s1065_s21, 128  ;;  %p849_p9 = scmp.lt.s32.totalorder %s1065_s21, %s1065_s21 }
  0x3b   : > { %p842_p5 = scmp.ne.s32.totalorder %s1065_s21, %s841_s28  ;;  %p850_p12 = scmp.lt.s32.totalorder %s841_s28, %s841_s28 }
  0x3d   : > { %p844_p6 = pnand %p842_p5, %p802_p1  ;;  %p851_p0 = por %p850_p12, %p849_p9 }
  0x3f   : > { %p845_p7 = pneg %p844_p6 }
  0x41   : > { %p852_p4 = pnand %p851_p0, %p845_p7 }
  0x43   : > { %855 = shalt.err (!%p852_p4)
}
  0x44   : > { %730 = dma.hbm_to_vmem [thread:$0]  (!%p1061_p13), %s1200_s4, 128, %s1065_s21, [#allocation6]  }
  0x45   : > { %p1222_p8 = scmp.ne.s32.totalorder %s1219_s15, 0 }
  0x46   : > { %p1223_p10 = scmp.ne.s32.totalorder (!%p1222_p8), %s1220_s16, 0 }
  0x47   : > { %301 = sbr.rel (%p1222_p8) target bundleno = 760 (0x2f8), region = 48 }
  0x4e   : > { %909 = dma.done.wait (%p1223_p10), [#allocation3], 2048  }
  0x4f   : > { %911 = vsyncadd (%p1223_p10), [#allocation3], 4294965248 }
  0x50   : > { %913 = dma.done.wait (%p1223_p10), [#allocation6], 128  }
  0x51   : > { %915 = vsyncadd (%p1223_p10), [#allocation6], 4294967168  ;;  %p343_p1 = scmp.lt.s32.totalorder %s934_s27, 1  ;;  %v948_v0 = vmov 0   ;;  %v949_v1 = vmov 0.0|0.0   ;;  %v364_v4 = vld [vmem:[#allocation2] sm:$0xff]  ;;  %v356_v30 = vlaneseq }
  0x52   : > { %797 = vset.pattern.permute.xlu0 %v948_v0  ;;  %690 = vmatprep.subr.bf16.mxu0 %v949_v1  ;;  %v365_v5 = vld [vmem:[#allocation2 + $0x8] sm:$0xff]  ;;  %v366_v6 = vld [vmem:[#allocation2 + $0x10] sm:$0xff]  ;;  %v367_v7 = vld [vmem:[#allocation2 + $0x18] sm:$0xff]  ;;  %vm950_vm1 = vmmov 0   ;;  %v951_v8 = vmov 0.0   ;;  %v952_v33 = vmov 1.0  }
  0x53   : > { %s344_s13 = scalar_select %p343_p1, %s934_s27, 1  ;;  %687 = vmatprep.mubr.msk.f32.mxu0 %vm950_vm1, %v951_v8  ;;  %v691_v10 = vpack.c.bf16 %v365_v5, %v364_v4  ;;  %v694_v11 = vpack.c.bf16 %v367_v7, %v366_v6  ;;  %v368_v12 = vld [vmem:[#allocation2 + $0x20] sm:$0xff]  ;;  %v369_v13 = vld [vmem:[#allocation2 + $0x28] sm:$0xff]  ;;  %v370_v15 = vld [vmem:[#allocation2 + $0x30] sm:$0xff]  ;;  %v357_v31 = vand.u32 127, %v356_v30  ;;  %v386_v34 = vshrl.u32 %v356_v30, 7 }
  0x54   : > { %v697_v14 = vpack.c.bf16 %v369_v13, %v368_v12  ;;  %v371_v16 = vld [vmem:[#allocation2 + $0x38] sm:$0xff]  ;;  %v372_v18 = vld [vmem:[#allocation2 + $0x40] sm:$0xff]  ;;  %v373_v19 = vld [vmem:[#allocation2 + $0x48] sm:$0xff]  ;;  %s339_s10 = sand.u32 1, %s926_s25   ;;  %s635_s26 = sshll.u32 %s934_s27, 7 }
  0x55   : > { %s628_s14 = sshll.u32 %s344_s13, 3  ;;  %692 = vmatpush3.bf16.msra.mxu0 %v691_v10  ;;  %v700_v17 = vpack.c.bf16 %v371_v16, %v370_v15  ;;  %v703_v20 = vpack.c.bf16 %v373_v19, %v372_v18  ;;  %v374_v21 = vld [vmem:[#allocation2 + $0x50] sm:$0xff]  ;;  %v375_v22 = vld [vmem:[#allocation2 + $0x58] sm:$0xff]  ;;  %v376_v24 = vld [vmem:[#allocation2 + $0x60] sm:$0xff]  ;;  %v387_v35 = vsub.s32 0, %v386_v34  ;;  %v397_v36 = vsub.s32 1, %v386_v34  ;;  %s1149_s18 = scalar_lea.hbm %s1203_s7, %s635_s26 }
  0x56   : > { %s352_s19 = scalar_lea.vmem %s1197_s1, %s628_s14  ;;  %s346_s23 = scalar_lea.vmem %s1196_s0, %s628_s14  ;;  %693 = vmatprep.subr.bf16.mxu0 %v949_v1  ;;  %v706_v23 = vpack.c.bf16 %v375_v22, %v374_v21  ;;  %v377_v25 = vld [vmem:[#allocation2 + $0x68] sm:$0xff]  ;;  %v378_v27 = vld [vmem:[#allocation2 + $0x70] sm:$0xff]  ;;  %v379_v28 = vld [vmem:[#allocation2 + $0x78] sm:$0xff]  ;;  %vm475_vm4 = vcmp.lt.s32.totalorder %v357_v31, 32 }
  0x57   : > { %v380_v2 = vld [vmem:[%s352_s19] sm:$0xff]  ;;  %v709_v26 = vpack.c.bf16 %v377_v25, %v376_v24  ;;  %v712_v29 = vpack.c.bf16 %v379_v28, %v378_v27  ;;  %v382_v41 = vld [vmem:[#allocation5] sm:$0xff]  ;;  %s627_s12 = sshll.u32 %s339_s10, 3  ;;  %s500_s19 = scalar_lea.sflag [#allocation4], %s339_s10 }
  0x58   : > { %v355_v3 = vld [vmem:[%s346_s23] sm:$0xff]  ;;  %vm389_vm0 = vcmp.eq.s32.totalorder %v380_v2, 1  ;;  %s341_s9 = scalar_lea.vmem [#allocation7], %s627_s12  ;;  %p1224_p11 = scmp.ne.s32.totalorder %s1215_s11, 0 }
  0x59   : > { %359 = vperm.xlu0 %797, %v355_v3   ;;  %v390_v9 = vsel %vm389_vm0, 1, %v948_v0  ;;  %695 = vmatpush3.bf16.msra.mxu0 %v694_v11  ;;  %v381_v37 = vld [vmem:[%s1199_s3] sm:$0x3]  ;;  %s514_s13 = sshll.u32 %s341_s9, 4  ;;  %s953_s27 = smov [#allocation7]   ;;  %s1151_s13 = int_to_ptr.vmem [resolvable:$true] %s514_s13 }
  0x5a   : > { %696 = vmatprep.subr.bf16.mxu0 %v949_v1  ;;  %v388_v39 = vrot.slane %v381_v37, %v387_v35  ;;  %v398_v40 = vrot.slane %v381_v37, %v397_v36  ;;  %v632_v56 = vld [vmem:[%s1201_s5] ss:$0 sm:$0xff]  ;;  %s856_s21 = scalar_lea.vmem %s1151_s13, 128  ;;  %s860_s22 = sshll.u32 %s953_s27, 4  ;;  %s861_s22 = int_to_ptr.vmem [resolvable:$false] %s860_s22 }
  0x5b   : > { %v633_v58 = vld [vmem:[%s1202_s6] ss:$0 sm:$0xff]  ;;  %p857_p13 = scmp.ne.s32.totalorder %s1151_s13, %s856_s21  ;;  %s862_s23 = scalar_lea.vmem %s861_s22, 256 }
  0x5c   : > { %p863_p5 = scmp.lt.s32.totalorder %s1151_s13, %s861_s22  ;;  %p864_p6 = scmp.lt.s32.totalorder %s862_s23, %s856_s21 }
  0x5d   : > { %392 = vperm.xlu0 %797, %v390_v9   ;;  %698 = vmatpush3.bf16.msra.mxu0 %v697_v14  ;;  %p858_p2 = pnand %p857_p13, %p1224_p11 }
  0x5e   : > { %699 = vmatprep.subr.bf16.mxu0 %v949_v1  ;;  %p865_p7 = por %p864_p6, %p863_p5 }
  0x5f   : > { %p859_p3 = pneg %p858_p2 }
  0x61   : > { %701 = vmatpush3.bf16.msra.mxu0 %v700_v17  ;;  %p866_p9 = pnand %p865_p7, %p859_p3 }
  0x62   : > { %702 = vmatprep.subr.bf16.mxu0 %v949_v1 }
  0x65   : > { %704 = vmatpush3.bf16.msra.mxu0 %v703_v20 }
  0x66   : > { %705 = vmatprep.subr.bf16.mxu0 %v949_v1 }
  0x69   : > { %707 = vmatpush3.bf16.msra.mxu0 %v706_v23 }
  0x6a   : > { %708 = vmatprep.subr.bf16.mxu0 %v949_v1 }
  0x6d   : > { %710 = vmatpush3.bf16.msra.mxu0 %v709_v26 }
  0x6e   : > { %711 = vmatprep.subr.bf16.mxu0 %v949_v1 }
  0x71   : > { %713 = vmatpush3.bf16.msra.mxu0 %v712_v29 }
  0xd8   : > { %v360_v32 = vpop.permute.xlu0 %359 }
  0xd9   : > { %vm361_vm2 = vcmp.eq.s32.totalorder %v360_v32, %v357_v31 }
  0xda   : > { %688 = vmatmul.mubr.msk.f32.vlgmr.msra.gmra.mrb[0].mxu0 %vm361_vm2, %v952_v33 }
  0xdc   : > { %v393_v38 = vpop.permute.xlu0 %392 }
  0xdd   : > { %vm394_vm3 = vcmp.eq.s32.totalorder %v393_v38, 1 }
  0xde   : > { %v399_v45 = vsel %vm394_vm3, %v398_v40, %v388_v39 }
 0x1ad   : > { %v466_v42 = vpop.f32.mrb[0].mxu0 }
 0x1ae   : > { %v467_v43 = vadd.f32 %v466_v42, %v382_v41  ;;  %v689_v44 = vpop.f32.mrb[1].mxu0 }
 0x1b0   : > { %v470_v46 = vadd.f32 %v467_v43, %v399_v45 }
 0x1b2   : > { %471 = vadd.xlane.f32.xlu1 %v470_v46 }
 0x23f   : > { %v472_v47 = vpop.xlane.xlu1 %471 }
 0x240   : > { %v473_v48 = vmul.f32 0.03125, %v472_v47 }
 0x242   : > { %v474_v49 = vsub.f32 %v470_v46, %v473_v48 }
 0x244   : > { %v476_v50 = vsel %vm475_vm4, %v474_v49, 0.0 }
 0x245   : > { %v477_v51 = vmul.f32 %v476_v50, %v476_v50 }
 0x247   : > { %478 = vadd.xlane.f32.xlu1 %v477_v51 }
 0x2d4   : > { %v479_v52 = vpop.xlane.xlu1 %478 }
 0x2d5   : > { %v480_v53 = vmul.f32 0.03125, %v479_v52 }
 0x2d7   : > { %v481_v54 = vadd.f32 1e-12, %v480_v53 }
 0x2d9   : > { %798 = vrsqrt.f32 %v481_v54 }
 0x2e3   : > { %v799_v55 = vpop.eup %798 }
 0x2e4   : > { %v483_v57 = vmul.f32 %v799_v55, %v476_v50 }
 0x2e6   : > { %v490_v59 = vmul.f32 %v632_v56, %v483_v57 }
 0x2e8   : > { %v497_v60 = vadd.f32 %v633_v58, %v490_v59 }
 0x2ea   : > { %498 = vst [vmem:[%s341_s9] sm:$0xff] %v497_v60 }
 0x2eb   : > { %869 = shalt.err (!%p866_p9)
}
 0x2ec   : > { %s870_s16 = scalar_lea.hbm %s1149_s18, 128  ;;  %s874_s12 = scalar_lea.hbm %s1203_s7, 256 }
 0x2ed   : > { %p871_p12 = scmp.ne.s32.totalorder %s1149_s18, %s870_s16  ;;  %p875_p8 = scmp.lt.u32.totalorder %s1149_s18, %s1203_s7 }
 0x2ee   : > { %p876_p10 = scmp.lt.u32.totalorder %s874_s12, %s870_s16  ;;  %p878_p13 = scmp.lt.u32.totalorder %s870_s16, %s1149_s18 }
 0x2ef   : > { %p872_p0 = pnand %p871_p12, %p1224_p11 }
 0x2f0   : > { %p877_p1 = por %p876_p10, %p875_p8 }
 0x2f1   : > { %p873_p4 = pneg %p872_p0 }
 0x2f2   : > { %p879_p2 = por %p878_p13, %p877_p1 }
 0x2f4   : > { %p880_p3 = pnand %p879_p2, %p873_p4 }
 0x2f6   : > { %883 = shalt.err (!%p880_p3)
}
 0x2f7   : > { %722 = dma.vmem_to_hbm [thread:$0]  (%p1224_p11), %s1151_s13, 128, %s1149_s18, %s500_s19  }
 0x2f8 PF: > { %s1225_s30 = sld [smem:[#allocation14_spill]]  ;;  %p739_p5 = scmp.ge.s32.totalorder %s942_s29, 2 }
 0x2f9   : > { %s526_s28 = sand.u32 1, %s922_s24  }
 0x2fa   : > { %s527_s26 = scalar_lea.sflag [#allocation4], %s526_s28 }
 0x2fe   : > { %p1226_p6 = scmp.ne.s32.totalorder %s1225_s30, 0 }
 0x300   : > { %p732_p7 = pnand %p739_p5, %p1226_p6 }
 0x302   : > { %917 = dma.done.wait (!%p732_p7), %s527_s26, 128  }
 0x303   : > { %919 = vsyncadd (!%p732_p7), %s527_s26, 4294967168  ;;  %s22_s29 = sadd.s32 1, %s942_s29   ;;  %s1227_s9 = sld [smem:[#allocation11_spill]] }
 0x304   : > { %p19_p9 = scmp.ge.s32.totalorder %s22_s29, 4   ;;  %s1228_s26 = sld [smem:[#allocation15_spill]] }
 0x305   : > { %s1229_s27 = sld [smem:[#allocation12_spill]]  ;;  %s1230_s28 = sld [smem:[#allocation13_spill]] }
 0x306   : > { %s1231_s24 = smov %s926_s25  ;;  %21 = sbr.rel (!%p19_p9) target bundleno = 6 (0x6), region = 96 }
 0x309   : > { %s1232_s25 = smov %s1227_s9 }
 0x30d   :  { %532 = vsyncpa [#allocation3], 1 }
 0x30e   :  { %534 = vsyncpa [#allocation3 + $0x1], 1 }
 0x30f   :  { %535 = vsyncpa [#allocation6], 1 }
 0x310   :  { %536 = vsyncpa [#allocation4], 1 }
 0x311   :  { %538 = vsyncpa [#allocation4 + $0x1], 1 }

// kernel: tpu_custom_call.1
= control target key start
LH: loop header
LB: loop body
LE: loop exit
PB: predicated region body
PF: predicated region fallthrough
CT: control target
= control target key end

     0   :  { %12 = vsyncpa [#allocation3], 0  ;;  %s1196_s0 = inlined_call_operand.vmem [shape: s32[16,1], index: 0, kind: input, shape index: {}]   ;;  %s1197_s1 = inlined_call_operand.vmem [shape: s32[16,1], index: 1, kind: input, shape index: {}]   ;;  %s1198_s2 = inlined_call_operand.hbm [shape: f32[128,128], index: 2, kind: input, shape index: {}]   ;;  %s1199_s3 = inlined_call_operand.vmem [shape: f32[2,128], index: 3, kind: input, shape index: {}]   ;;  %s1200_s4 = inlined_call_operand.hbm [shape: f32[512,128], index: 4, kind: input, shape index: {}]   ;;  %s1201_s5 = inlined_call_operand.vmem [shape: f32[1,128], index: 5, kind: input, shape index: {}]   ;;  %s1202_s6 = inlined_call_operand.vmem [shape: f32[1,128], index: 6, kind: input, shape index: {}]   ;;  %s1203_s7 = inlined_call_operand.hbm [shape: f32[16,128], index: 7, kind: output, shape index: {}]  }
   0x1   :  { %13 = vsyncpa [#allocation6], 0 }
   0x2   :  { %14 = vsyncpa [#allocation4], 0 }
   0x3   :  { %16 = vsyncpa [#allocation4 + $0x1], 0  ;;  %s994_s24 = smov 0   ;;  %s996_s25 = smov 0  }
   0x4   :  { %s998_s26 = smov 0   ;;  %s1000_s27 = smov 0  }
   0x5   :  { %s1002_s28 = smov 0   ;;  %s1004_s29 = smov 0  }
   0x6 LB: > { %1212 = sst [smem:[#allocation11_spill]] %s930_s26  ;;  %s618_s30 = sadd.s32 4294967295, %s942_s29   ;;  %s942_s29 = sphi %s1004_s29, %s22_s29   ;;  %s938_s28 = sphi %s1002_s28, %s1230_s28   ;;  %s934_s27 = sphi %s1000_s27, %s1229_s27   ;;  %s930_s26 = sphi %s998_s26, %s1228_s26   ;;  %s926_s25 = sphi %s996_s25, %s1232_s25   ;;  %s922_s24 = sphi %s994_s24, %s1231_s24  }
   0x7   : > { %1213 = sst [smem:[#allocation12_spill]] %s938_s28  ;;  %s619_s8 = sadd.s32 4294967294, %s942_s29  }
   0x8   : > { %s34_s9 = sadd.s32 1, %s938_s28  ;;  %s209_s10 = sadd.s32 1, %s930_s26 }
   0x9   : > { %p36_p0 = scmp.ge.s32.totalorder %s34_s9, 2  ;;  %p219_p1 = scmp.ne.s32.totalorder %s930_s26, %s926_s25 }
   0xa   : > { %p220_p2 = scmp.eq.s32.totalorder %s618_s30, 1  ;;  %p225_p3 = scmp.ne.s32.totalorder %s926_s25, %s922_s24 }
   0xb   : > { %s1234_s9 = smov (%p36_p0, %s34_s9), 0  ;;  %p226_p5 = scmp.eq.s32.totalorder %s619_s8, 1 }
   0xc   : > { %1214 = sst [smem:[#allocation13_spill]] %s1234_s9  ;;  %p1034_p4 = por %p220_p2, %p219_p1 }
   0xd   : > { %s206_s12 = ssub.s32 %s938_s28, %s1234_s9  ;;  %p620_p6 = scmp.ge.s32.totalorder %s942_s29, 1 }
   0xe   : > { %s1215_s11 = scalar_select %p1034_p4, 1, 0 }
   0xf   : > { %p207_p7 = scmp.eq.s32.totalorder %s206_s12, 0  ;;  %p1041_p8 = por %p226_p5, %p225_p3 }
  0x10   : > { %p233_p9 = scmp.lt.s32.totalorder %s942_s29, 3  ;;  %p1053_p11 = scmp.eq.s32.totalorder %s618_s30, 0 }
  0x11   : > { %s1216_s13 = scalar_select %p1041_p8, 1, 0 }
  0x12   : > { %s1047_s14 = scalar_select %p207_p7, %s930_s26, %s209_s10  }
  0x13   : > { %1217 = sst [smem:[#allocation14_spill]] %s1216_s13  ;;  %p1049_p10 = pnand %p620_p6, %p233_p9 }
  0x14   : > { %1218 = sst [smem:[#allocation15_spill]] %s1047_s14  ;;  %s944_s17 = smov [#allocation2]  }
  0x15   : > { %s1219_s15 = scalar_select %p1049_p10, 1, 0 }
  0x16   : > { %s1220_s16 = scalar_select %p1053_p11, 1, 0 }
  0x17   : > { %p724_p12 = pneg %p1049_p10  ;;  %s245_s18 = sshll.u32 %s944_s17, 4  ;;  %s246_s18 = int_to_ptr.vmem [resolvable:$true] %s245_s18 }
  0x18   : > { %s945_s20 = smov [#allocation5]   ;;  %s800_s30 = scalar_lea.hbm %s1198_s2, 2048 }
  0x19   : > { %p1061_p13 = pnand %p1053_p11, %p724_p12  ;;  %s264_s21 = sshll.u32 %s945_s20, 4  ;;  %s1065_s21 = int_to_ptr.vmem [resolvable:$true] %s264_s21 }
  0x1a   : > { %p801_p0 = scmp.ne.s32.totalorder %s1198_s2, %s800_s30  ;;  %p807_p5 = scmp.lt.u32.totalorder %s800_s30, %s1198_s2 }
  0x1b   : > { %p802_p1 = pneg %p1061_p13 }
  0x1d   : > { %p803_p2 = pnand %p802_p1, %p801_p0 }
  0x1f   : > { %p804_p3 = pneg %p803_p2 }
  0x21   : > { %p809_p6 = pnand %p807_p5, %p804_p3 }
  0x23   : > { %812 = shalt.err (!%p809_p6)
}
  0x24   : > { %s813_s20 = scalar_lea.vmem %s246_s18, 2048  ;;  %p821_p8 = scmp.lt.s32.totalorder %s246_s18, %s246_s18 }
  0x25   : > { %p814_p7 = scmp.ne.s32.totalorder %s246_s18, %s813_s20  ;;  %p822_p4 = scmp.lt.s32.totalorder %s813_s20, %s813_s20 }
  0x27   : > { %p816_p9 = pnand %p814_p7, %p802_p1  ;;  %p823_p11 = por %p822_p4, %p821_p8 }
  0x29   : > { %p817_p12 = pneg %p816_p9 }
  0x2b   : > { %p824_p10 = pnand %p823_p11, %p817_p12 }
  0x2d   : > { %827 = shalt.err (!%p824_p10)
}
  0x2e   : > { %s946_s22 = smov 128   ;;  %s947_s23 = smov 8  }
  0x2f   : > { %727 = dma.hbm_to_vmem [thread:$0]  (!%p1061_p13), %s1198_s2, 2048, %s246_s18, [#allocation3], %s946_s22, %s946_s22, %s947_s23  }
  0x30   : > { %s828_s17 = scalar_lea.hbm %s1200_s4, 128  ;;  %s833_s26 = scalar_lea.hbm %s1200_s4, 8192 }
  0x31   : > { %p829_p0 = scmp.ne.s32.totalorder %s1200_s4, %s828_s17  ;;  %p834_p10 = scmp.lt.u32.totalorder %s833_s26, %s828_s17 }
  0x32   : > { %p835_p11 = scmp.lt.u32.totalorder %s828_s17, %s1200_s4 }
  0x33   : > { %p831_p4 = pnand %p829_p0, %p802_p1 }
  0x34   : > { %p836_p2 = por %p835_p11, %p834_p10 }
  0x35   : > { %p832_p8 = pneg %p831_p4 }
  0x37   : > { %p837_p3 = pnand %p836_p2, %p832_p8 }
  0x39   : > { %840 = shalt.err (!%p837_p3)
}
  0x3a   : > { %s841_s28 = scalar_lea.vmem %s1065_s21, 128  ;;  %p849_p9 = scmp.lt.s32.totalorder %s1065_s21, %s1065_s21 }
  0x3b   : > { %p842_p5 = scmp.ne.s32.totalorder %s1065_s21, %s841_s28  ;;  %p850_p12 = scmp.lt.s32.totalorder %s841_s28, %s841_s28 }
  0x3d   : > { %p844_p6 = pnand %p842_p5, %p802_p1  ;;  %p851_p0 = por %p850_p12, %p849_p9 }
  0x3f   : > { %p845_p7 = pneg %p844_p6 }
  0x41   : > { %p852_p4 = pnand %p851_p0, %p845_p7 }
  0x43   : > { %855 = shalt.err (!%p852_p4)
}
  0x44   : > { %730 = dma.hbm_to_vmem [thread:$0]  (!%p1061_p13), %s1200_s4, 128, %s1065_s21, [#allocation6]  }
  0x45   : > { %p1222_p8 = scmp.ne.s32.totalorder %s1219_s15, 0 }
  0x46   : > { %p1223_p10 = scmp.ne.s32.totalorder (!%p1222_p8), %s1220_s16, 0 }
  0x47   : > { %301 = sbr.rel (%p1222_p8) target bundleno = 760 (0x2f8), region = 48 }
  0x4e   : > { %909 = dma.done.wait (%p1223_p10), [#allocation3], 2048  }
  0x4f   : > { %911 = vsyncadd (%p1223_p10), [#allocation3], 4294965248 }
  0x50   : > { %913 = dma.done.wait (%p1223_p10), [#allocation6], 128  }
  0x51   : > { %915 = vsyncadd (%p1223_p10), [#allocation6], 4294967168  ;;  %p343_p1 = scmp.lt.s32.totalorder %s934_s27, 1  ;;  %v948_v0 = vmov 0   ;;  %v949_v1 = vmov 0.0|0.0   ;;  %v364_v4 = vld [vmem:[#allocation2] sm:$0xff]  ;;  %v356_v30 = vlaneseq }
  0x52   : > { %797 = vset.pattern.permute.xlu0 %v948_v0  ;;  %690 = vmatprep.subr.bf16.mxu0 %v949_v1  ;;  %v365_v5 = vld [vmem:[#allocation2 + $0x8] sm:$0xff]  ;;  %v366_v6 = vld [vmem:[#allocation2 + $0x10] sm:$0xff]  ;;  %v367_v7 = vld [vmem:[#allocation2 + $0x18] sm:$0xff]  ;;  %vm950_vm1 = vmmov 0   ;;  %v951_v8 = vmov 0.0   ;;  %v952_v33 = vmov 1.0  }
  0x53   : > { %s344_s13 = scalar_select %p343_p1, %s934_s27, 1  ;;  %687 = vmatprep.mubr.msk.f32.mxu0 %vm950_vm1, %v951_v8  ;;  %v691_v10 = vpack.c.bf16 %v365_v5, %v364_v4  ;;  %v694_v11 = vpack.c.bf16 %v367_v7, %v366_v6  ;;  %v368_v12 = vld [vmem:[#allocation2 + $0x20] sm:$0xff]  ;;  %v369_v13 = vld [vmem:[#allocation2 + $0x28] sm:$0xff]  ;;  %v370_v15 = vld [vmem:[#allocation2 + $0x30] sm:$0xff]  ;;  %v357_v31 = vand.u32 127, %v356_v30  ;;  %v386_v34 = vshrl.u32 %v356_v30, 7 }
  0x54   : > { %v697_v14 = vpack.c.bf16 %v369_v13, %v368_v12  ;;  %v371_v16 = vld [vmem:[#allocation2 + $0x38] sm:$0xff]  ;;  %v372_v18 = vld [vmem:[#allocation2 + $0x40] sm:$0xff]  ;;  %v373_v19 = vld [vmem:[#allocation2 + $0x48] sm:$0xff]  ;;  %s339_s10 = sand.u32 1, %s926_s25   ;;  %s635_s26 = sshll.u32 %s934_s27, 7 }
  0x55   : > { %s628_s14 = sshll.u32 %s344_s13, 3  ;;  %692 = vmatpush3.bf16.msra.mxu0 %v691_v10  ;;  %v700_v17 = vpack.c.bf16 %v371_v16, %v370_v15  ;;  %v703_v20 = vpack.c.bf16 %v373_v19, %v372_v18  ;;  %v374_v21 = vld [vmem:[#allocation2 + $0x50] sm:$0xff]  ;;  %v375_v22 = vld [vmem:[#allocation2 + $0x58] sm:$0xff]  ;;  %v376_v24 = vld [vmem:[#allocation2 + $0x60] sm:$0xff]  ;;  %v387_v35 = vsub.s32 0, %v386_v34  ;;  %v397_v36 = vsub.s32 1, %v386_v34  ;;  %s1149_s18 = scalar_lea.hbm %s1203_s7, %s635_s26 }
  0x56   : > { %s352_s19 = scalar_lea.vmem %s1197_s1, %s628_s14  ;;  %s346_s23 = scalar_lea.vmem %s1196_s0, %s628_s14  ;;  %693 = vmatprep.subr.bf16.mxu0 %v949_v1  ;;  %v706_v23 = vpack.c.bf16 %v375_v22, %v374_v21  ;;  %v377_v25 = vld [vmem:[#allocation2 + $0x68] sm:$0xff]  ;;  %v378_v27 = vld [vmem:[#allocation2 + $0x70] sm:$0xff]  ;;  %v379_v28 = vld [vmem:[#allocation2 + $0x78] sm:$0xff]  ;;  %vm475_vm4 = vcmp.lt.s32.totalorder %v357_v31, 32 }
  0x57   : > { %v380_v2 = vld [vmem:[%s352_s19] sm:$0xff]  ;;  %v709_v26 = vpack.c.bf16 %v377_v25, %v376_v24  ;;  %v712_v29 = vpack.c.bf16 %v379_v28, %v378_v27  ;;  %v382_v41 = vld [vmem:[#allocation5] sm:$0xff]  ;;  %s627_s12 = sshll.u32 %s339_s10, 3  ;;  %s500_s19 = scalar_lea.sflag [#allocation4], %s339_s10 }
  0x58   : > { %v355_v3 = vld [vmem:[%s346_s23] sm:$0xff]  ;;  %vm389_vm0 = vcmp.eq.s32.totalorder %v380_v2, 1  ;;  %s341_s9 = scalar_lea.vmem [#allocation7], %s627_s12  ;;  %p1224_p11 = scmp.ne.s32.totalorder %s1215_s11, 0 }
  0x59   : > { %359 = vperm.xlu0 %797, %v355_v3   ;;  %v390_v9 = vsel %vm389_vm0, 1, %v948_v0  ;;  %695 = vmatpush3.bf16.msra.mxu0 %v694_v11  ;;  %v381_v37 = vld [vmem:[%s1199_s3] sm:$0x3]  ;;  %s514_s13 = sshll.u32 %s341_s9, 4  ;;  %s953_s27 = smov [#allocation7]   ;;  %s1151_s13 = int_to_ptr.vmem [resolvable:$true] %s514_s13 }
  0x5a   : > { %696 = vmatprep.subr.bf16.mxu0 %v949_v1  ;;  %v388_v39 = vrot.slane %v381_v37, %v387_v35  ;;  %v398_v40 = vrot.slane %v381_v37, %v397_v36  ;;  %v632_v56 = vld [vmem:[%s1201_s5] ss:$0 sm:$0xff]  ;;  %s856_s21 = scalar_lea.vmem %s1151_s13, 128  ;;  %s860_s22 = sshll.u32 %s953_s27, 4  ;;  %s861_s22 = int_to_ptr.vmem [resolvable:$false] %s860_s22 }
  0x5b   : > { %v633_v58 = vld [vmem:[%s1202_s6] ss:$0 sm:$0xff]  ;;  %p857_p13 = scmp.ne.s32.totalorder %s1151_s13, %s856_s21  ;;  %s862_s23 = scalar_lea.vmem %s861_s22, 256 }
  0x5c   : > { %p863_p5 = scmp.lt.s32.totalorder %s1151_s13, %s861_s22  ;;  %p864_p6 = scmp.lt.s32.totalorder %s862_s23, %s856_s21 }
  0x5d   : > { %392 = vperm.xlu0 %797, %v390_v9   ;;  %698 = vmatpush3.bf16.msra.mxu0 %v697_v14  ;;  %p858_p2 = pnand %p857_p13, %p1224_p11 }
  0x5e   : > { %699 = vmatprep.subr.bf16.mxu0 %v949_v1  ;;  %p865_p7 = por %p864_p6, %p863_p5 }
  0x5f   : > { %p859_p3 = pneg %p858_p2 }
  0x61   : > { %701 = vmatpush3.bf16.msra.mxu0 %v700_v17  ;;  %p866_p9 = pnand %p865_p7, %p859_p3 }
  0x62   : > { %702 = vmatprep.subr.bf16.mxu0 %v949_v1 }
  0x65   : > { %704 = vmatpush3.bf16.msra.mxu0 %v703_v20 }
  0x66   : > { %705 = vmatprep.subr.bf16.mxu0 %v949_v1 }
  0x69   : > { %707 = vmatpush3.bf16.msra.mxu0 %v706_v23 }
  0x6a   : > { %708 = vmatprep.subr.bf16.mxu0 %v949_v1 }
  0x6d   : > { %710 = vmatpush3.bf16.msra.mxu0 %v709_v26 }
  0x6e   : > { %711 = vmatprep.subr.bf16.mxu0 %v949_v1 }
  0x71   : > { %713 = vmatpush3.bf16.msra.mxu0 %v712_v29 }
  0xd8   : > { %v360_v32 = vpop.permute.xlu0 %359 }
  0xd9   : > { %vm361_vm2 = vcmp.eq.s32.totalorder %v360_v32, %v357_v31 }
  0xda   : > { %688 = vmatmul.mubr.msk.f32.vlgmr.msra.gmra.mrb[0].mxu0 %vm361_vm2, %v952_v33 }
  0xdc   : > { %v393_v38 = vpop.permute.xlu0 %392 }
  0xdd   : > { %vm394_vm3 = vcmp.eq.s32.totalorder %v393_v38, 1 }
  0xde   : > { %v399_v45 = vsel %vm394_vm3, %v398_v40, %v388_v39 }
 0x1ad   : > { %v466_v42 = vpop.f32.mrb[0].mxu0 }
 0x1ae   : > { %v467_v43 = vadd.f32 %v466_v42, %v382_v41  ;;  %v689_v44 = vpop.f32.mrb[1].mxu0 }
 0x1b0   : > { %v470_v46 = vadd.f32 %v467_v43, %v399_v45 }
 0x1b2   : > { %471 = vadd.xlane.f32.xlu1 %v470_v46 }
 0x23f   : > { %v472_v47 = vpop.xlane.xlu1 %471 }
 0x240   : > { %v473_v48 = vmul.f32 0.03125, %v472_v47 }
 0x242   : > { %v474_v49 = vsub.f32 %v470_v46, %v473_v48 }
 0x244   : > { %v476_v50 = vsel %vm475_vm4, %v474_v49, 0.0 }
 0x245   : > { %v477_v51 = vmul.f32 %v476_v50, %v476_v50 }
 0x247   : > { %478 = vadd.xlane.f32.xlu1 %v477_v51 }
 0x2d4   : > { %v479_v52 = vpop.xlane.xlu1 %478 }
 0x2d5   : > { %v480_v53 = vmul.f32 0.03125, %v479_v52 }
 0x2d7   : > { %v481_v54 = vadd.f32 1e-12, %v480_v53 }
 0x2d9   : > { %798 = vrsqrt.f32 %v481_v54 }
 0x2e3   : > { %v799_v55 = vpop.eup %798 }
 0x2e4   : > { %v483_v57 = vmul.f32 %v799_v55, %v476_v50 }
 0x2e6   : > { %v490_v59 = vmul.f32 %v632_v56, %v483_v57 }
 0x2e8   : > { %v497_v60 = vadd.f32 %v633_v58, %v490_v59 }
 0x2ea   : > { %498 = vst [vmem:[%s341_s9] sm:$0xff] %v497_v60 }
 0x2eb   : > { %869 = shalt.err (!%p866_p9)
}
 0x2ec   : > { %s870_s16 = scalar_lea.hbm %s1149_s18, 128  ;;  %s874_s12 = scalar_lea.hbm %s1203_s7, 256 }
 0x2ed   : > { %p871_p12 = scmp.ne.s32.totalorder %s1149_s18, %s870_s16  ;;  %p875_p8 = scmp.lt.u32.totalorder %s1149_s18, %s1203_s7 }
 0x2ee   : > { %p876_p10 = scmp.lt.u32.totalorder %s874_s12, %s870_s16  ;;  %p878_p13 = scmp.lt.u32.totalorder %s870_s16, %s1149_s18 }
 0x2ef   : > { %p872_p0 = pnand %p871_p12, %p1224_p11 }
 0x2f0   : > { %p877_p1 = por %p876_p10, %p875_p8 }
 0x2f1   : > { %p873_p4 = pneg %p872_p0 }
 0x2f2   : > { %p879_p2 = por %p878_p13, %p877_p1 }
 0x2f4   : > { %p880_p3 = pnand %p879_p2, %p873_p4 }
 0x2f6   : > { %883 = shalt.err (!%p880_p3)
}
 0x2f7   : > { %722 = dma.vmem_to_hbm [thread:$0]  (%p1224_p11), %s1151_s13, 128, %s1149_s18, %s500_s19  }
 0x2f8 PF: > { %s1225_s30 = sld [smem:[#allocation14_spill]]  ;;  %p739_p5 = scmp.ge.s32.totalorder %s942_s29, 2 }
 0x2f9   : > { %s526_s28 = sand.u32 1, %s922_s24  }
 0x2fa   : > { %s527_s26 = scalar_lea.sflag [#allocation4], %s526_s28 }
 0x2fe   : > { %p1226_p6 = scmp.ne.s32.totalorder %s1225_s30, 0 }
 0x300   : > { %p732_p7 = pnand %p739_p5, %p1226_p6 }
 0x302   : > { %917 = dma.done.wait (!%p732_p7), %s527_s26, 128  }
 0x303   : > { %919 = vsyncadd (!%p732_p7), %s527_s26, 4294967168  ;;  %s22_s29 = sadd.s32 1, %s942_s29   ;;  %s1227_s9 = sld [smem:[#allocation11_spill]] }
 0x304   : > { %p19_p9 = scmp.ge.s32.totalorder %s22_s29, 4   ;;  %s1228_s26 = sld [smem:[#allocation15_spill]] }
 0x305   : > { %s1229_s27 = sld [smem:[#allocation12_spill]]  ;;  %s1230_s28 = sld [smem:[#allocation13_spill]] }
 0x306   : > { %s1231_s24 = smov %s926_s25  ;;  %21 = sbr.rel (!%p19_p9) target bundleno = 6 (0x6), region = 96 }
 0x309   : > { %s1232_s25 = smov %s1227_s9 }
 0x30d   :  { %532 = vsyncpa [#allocation3], 1 }
 0x30e   :  { %534 = vsyncpa [#allocation3 + $0x1], 1 }
 0x30f   :  { %535 = vsyncpa [#allocation6], 1 }
 0x310   :  { %536 = vsyncpa [#allocation4], 1 }
 0x311   :  { %538 = vsyncpa [#allocation4 + $0x1], 1 }

</bundles_post_ra>
